<compile_context>
chip_gen: v5e
topology: v5e:2x2
jax: 0.10.0
libtpu: 0.0.40
codegen_flags: <defaults>
</compile_context>

<pallas_src>
import functools

import jax
import jax.numpy as jnp
from jax.experimental import pallas as pl
from jax.experimental.pallas import tpu as pltpu


def _round_up(x, m):
    return (x + m - 1) // m * m


def _choose_batch_tile(n, c):
    """Samples per grid step.  With a small contraction dim (C) the MXU is
    mostly idle per push and per-grid-step fixed cost dominates, so batch
    several samples per step (each still gets its own masked weight tile)."""
    if c >= 64 or n == 1:
        return 1
    for t in (16, 8):
        if n % t == 0:
            return t
    return n if n <= 16 else 1


def _choose_hw_tile(hw, c, o, tn, itemsize, vmem_budget_bytes=20 * 1024 * 1024):
    """Lane-axis (flattened H*W) tile: a multiple of 128, large enough to
    amortize the ~0.35us/step overhead, small enough that the double-buffered
    working set fits comfortably in scoped VMEM on v5e/v6e/v7x alike."""
    hw128 = _round_up(hw, 128)
    # double-buffered x and out tiles in native dtype plus f32 temporaries
    per_lane_bytes = tn * (2 * (c + o) * itemsize + (c + o) * 4)
    max_thw = max(128, (vmem_budget_bytes // per_lane_bytes) // 128 * 128)
    return int(min(hw128, max_thw, 2048))


def _reconstruct_kernel(w_ref, m_ref, x_ref, o_ref, *, skip_connect):
    # w_ref: (O, C)       f32, sigmoid already applied (tiny, wrapper-precomputed)
    # m_ref: (TN, C)      f32, per-sample channel mask, C on the lane axis
    # x_ref: (TN, C, THW) native dtype, fed straight to the MXU
    # o_ref: (TN, O, THW)
    w = w_ref[...]                                               # (O, C)  f32
    m = m_ref[...]                                               # (TN, C) f32
    # Fold the mask into the tiny weight tile instead of the big activation:
    #   sigmoid(W) @ (m * x) == (sigmoid(W) * m) @ x
    wm = (w[None, :, :] * m[:, None, :]).astype(x_ref.dtype)     # (TN, O, C)
    x = x_ref[...]                                               # (TN, C, THW)
    out = jnp.einsum("noc,ncs->nos", wm, x,
                     preferred_element_type=jnp.float32)         # (TN, O, THW) f32
    if skip_connect:
        # cat([out, x], dim=-1) then sum over that dim  ==  out + x
        out = out + x.astype(jnp.float32)
    o_ref[...] = out.astype(o_ref.dtype)


def reconstruct_layer_forward(x_nchw, conv_weight, map_mask, *, skip_connect=True,
                              batch_tile=None, hw_tile=None):
    """x_nchw: (N, C, H, W); conv_weight: (O, C, 1, 1); map_mask: (N, C)."""
    N, C, H, W = x_nchw.shape
    O = conv_weight.shape[0]
    if skip_connect and O != C:
        raise ValueError("skip_connect=True requires out_channels == in_channels")
    HW = H * W

    # Tiny (O, C): compute sigmoid once here instead of on every grid step.
    w_sig = jax.nn.sigmoid(conv_weight.reshape(O, C).astype(jnp.float32))
    # Keep the mask in f32; it is applied to the f32 weight tile in-kernel.
    m = map_mask.reshape(N, C).astype(jnp.float32)

    TN = batch_tile if batch_tile is not None else _choose_batch_tile(N, C)
    itemsize = jnp.dtype(x_nchw.dtype).itemsize
    THW = hw_tile if hw_tile is not None else _choose_hw_tile(HW, C, O, TN, itemsize)

    # Keep the output lane-dense: pad flattened spatial up to a tile multiple.
    HW_pad = _round_up(HW, THW)
    x = x_nchw.reshape(N, C, HW)
    if HW_pad != HW:
        x = jnp.pad(x, ((0, 0), (0, 0), (0, HW_pad - HW)))

    grid = (N // TN, HW_pad // THW)
    kernel = functools.partial(_reconstruct_kernel, skip_connect=skip_connect)

    out = pl.pallas_call(
        kernel,
        out_shape=jax.ShapeDtypeStruct((N, O, HW_pad), x_nchw.dtype),
        grid_spec=pltpu.PrefetchScalarGridSpec(
            num_scalar_prefetch=0,
            grid=grid,
            in_specs=[
                pl.BlockSpec((O, C), lambda n, h: (0, 0)),        # sigmoid(W), VMEM-resident
                pl.BlockSpec((TN, C), lambda n, h: (n, 0)),       # channel mask, C on lanes
                pl.BlockSpec((TN, C, THW), lambda n, h: (n, 0, h)),
            ],
            out_specs=pl.BlockSpec((TN, O, THW), lambda n, h: (n, 0, h)),
        ),
        compiler_params=pltpu.CompilerParams(
            dimension_semantics=("parallel", "parallel"),
            vmem_limit_bytes=32 * 1024 * 1024,
        ),
    )(w_sig, m, x)

    if HW_pad != HW:
        out = out[:, :, :HW]
    return out.reshape(N, O, H, W)


if __name__ == "__main__":
    key = jax.random.PRNGKey(0)
    kx, kw, kd1, kd2 = jax.random.split(key, 4)

    # Small shapes consistent with the module (in_channels == out_channels so
    # the skip connection is well-defined).
    N, C, H, W = 2, 4, 16, 16
    O = C
    p_des, p_drop = 0.2, 0.6
    skip_connect = True

    x = jax.random.normal(kx, (N, C, H, W), dtype=jnp.float32)
    conv_weight = 0.1 * jax.random.normal(kw, (O, C, 1, 1), dtype=jnp.float32)

    # Deterministic stand-in for:  random.random() <= p_drop  ->  Dropout(p_des)
    # on a ones mask of shape (N, C) (inverted-dropout scaling 1/(1-p_des)).
    apply_drop = jax.random.uniform(kd1, ()) <= p_drop
    keep = (jax.random.bernoulli(kd2, 1.0 - p_des, (N, C)).astype(jnp.float32)
            / (1.0 - p_des))
    map_mask = jnp.where(apply_drop, keep, jnp.ones((N, C), jnp.float32))

    out = reconstruct_layer_forward(x, conv_weight, map_mask,
                                    skip_connect=skip_connect)
    out = jax.block_until_ready(out)

    # Pure-JAX reference of the exact forward semantics.
    w_sig_ref = jax.nn.sigmoid(conv_weight.reshape(O, C))
    x_mask = x * map_mask[:, :, None, None]
    ref = jnp.einsum("oc,nchw->nohw", w_sig_ref, x_mask)
    if skip_connect:
        ref = ref + x

    assert out.shape == (N, O, H, W)
    assert jnp.allclose(out, ref, atol=1e-5, rtol=1e-5), "kernel/reference mismatch"
    print("KERNEL_OK")
</pallas_src>

<mosaic_0001>
module attributes {stable_mosaic.version = 11 : i64} {
  func.func @_reconstruct_kernel(%arg0: i32, %arg1: i32, %arg2: memref<4x4xf32, #tpu.memory_space<vmem>>, %arg3: memref<2x4xf32, #tpu.memory_space<vmem>>, %arg4: memref<2x4x256xf32, #tpu.memory_space<vmem>>, %arg5: memref<2x4x256xf32, #tpu.memory_space<vmem>>) attributes {dimension_semantics = [#tpu.dimension_semantics<parallel>, #tpu.dimension_semantics<parallel>], iteration_bounds = array<i64: 1, 1>, scalar_prefetch = 0 : i64, scratch_operands = 0 : i64, tpu.core_type = #tpu.core_type<tc>, window_params = [{pipeline_mode = #tpu.pipeline_mode<synchronous>, transform_indices = @transform_0, window_bounds = array<i64: 4, 4>}, {transform_indices = @transform_1, window_bounds = array<i64: 2, 4>}, {transform_indices = @transform_2, window_bounds = array<i64: 2, 4, 256>}, {transform_indices = @transform_3, window_bounds = array<i64: 2, 4, 256>}]} {
    %c0 = arith.constant 0 : index
    %c0_0 = arith.constant 0 : index
    %0 = vector.load %arg2[%c0, %c0_0] : memref<4x4xf32, #tpu.memory_space<vmem>>, vector<4x4xf32>
    %c0_1 = arith.constant 0 : index
    %c0_2 = arith.constant 0 : index
    %1 = vector.load %arg3[%c0_1, %c0_2] : memref<2x4xf32, #tpu.memory_space<vmem>>, vector<2x4xf32>
    %2 = vector.shape_cast %0 : vector<4x4xf32> to vector<1x4x4xf32>
    %3 = vector.shape_cast %1 : vector<2x4xf32> to vector<2x1x4xf32>
    %4 = vector.broadcast %2 : vector<1x4x4xf32> to vector<2x4x4xf32>
    %5 = vector.broadcast %3 : vector<2x1x4xf32> to vector<2x4x4xf32>
    %6 = arith.mulf %4, %5 : vector<2x4x4xf32>
    %c0_3 = arith.constant 0 : index
    %c0_4 = arith.constant 0 : index
    %c0_5 = arith.constant 0 : index
    %7 = vector.load %arg4[%c0_3, %c0_4, %c0_5] : memref<2x4x256xf32, #tpu.memory_space<vmem>>, vector<2x4x256xf32>
    "tpu.trace_start"() <{level = 10 : i32, message = "noc,ncs->nos"}> : () -> ()
    %cst = arith.constant dense<0.000000e+00> : vector<2x4x256xf32>
    %8 = tpu.matmul %6, %7, %cst {dimension_numbers = #tpu.dot_dimension_numbers<[2], [1], [1], [2], [0, 0, 0, 1, 1, 2], [0], [0]>} : vector<2x4x4xf32>, vector<2x4x256xf32>, vector<2x4x256xf32> -> vector<2x4x256xf32>
    "tpu.trace_stop"() : () -> ()
    %9 = arith.addf %8, %7 : vector<2x4x256xf32>
    %c0_6 = arith.constant 0 : index
    %c0_7 = arith.constant 0 : index
    %c0_8 = arith.constant 0 : index
    %10 = vector.load %arg5[%c0_6, %c0_7, %c0_8] : memref<2x4x256xf32, #tpu.memory_space<vmem>>, vector<2x4x256xf32>
    tpu.vector_store %arg5[%c0_6, %c0_7, %c0_8], %9 {strides = array<i32>} : memref<2x4x256xf32, #tpu.memory_space<vmem>>, vector<2x4x256xf32>,
    return
  }
  func.func @transform_0(%arg0: i32, %arg1: i32) -> (i32, i32) {
    %c0_i32 = arith.constant 0 : i32
    %c0_i32_0 = arith.constant 0 : i32
    %c0_i32_1 = arith.constant 0 : i32
    return %c0_i32, %c0_i32_0 : i32, i32
  }
  func.func @transform_1(%arg0: i32, %arg1: i32) -> (i32, i32) {
    %c0_i32 = arith.constant 0 : i32
    %c0_i32_0 = arith.constant 0 : i32
    return %arg0, %c0_i32 : i32, i32
  }
  func.func @transform_2(%arg0: i32, %arg1: i32) -> (i32, i32, i32) {
    %c0_i32 = arith.constant 0 : i32
    %c0_i32_0 = arith.constant 0 : i32
    return %arg0, %c0_i32, %arg1 : i32, i32, i32
  }
  func.func @transform_3(%arg0: i32, %arg1: i32) -> (i32, i32, i32) {
    %c0_i32 = arith.constant 0 : i32
    %c0_i32_0 = arith.constant 0 : i32
    return %arg0, %c0_i32, %arg1 : i32, i32, i32
  }
}

</mosaic_0001>

<bundles_post_ra>
// kernel: tpu_custom_call.1
= control target key start
LH: loop header
LB: loop body
LE: loop exit
PB: predicated region body
PF: predicated region fallthrough
CT: control target
= control target key end

     0   :  { %8 = vsyncpa [#allocation3], 0  ;;  %s386_s0 = inlined_call_operand.hbm [shape: f32[4,4], index: 0, kind: input, shape index: {}]   ;;  %s387_s1 = inlined_call_operand.hbm [shape: f32[2,4], index: 1, kind: input, shape index: {}]   ;;  %s388_s2 = inlined_call_operand.hbm [shape: f32[2,4,256], index: 2, kind: input, shape index: {}]   ;;  %s389_s3 = inlined_call_operand.hbm [shape: f32[2,4,256], index: 3, kind: output, shape index: {}]  }
   0x1   :  { %9 = vsyncpa [#allocation6], 0  ;;  %s27_s14 = sshll.u32 %s387_s1, 4  ;;  %s28_s14 = int_to_ptr.hbm [resolvable:$true] %s27_s14 }
   0x2   :  { %10 = vsyncpa [#allocation4], 0  ;;  %s332_s15 = smov [#allocation5]   ;;  %s16_s19 = sshll.u32 %s386_s0, 4  ;;  %s17_s19 = int_to_ptr.hbm [resolvable:$true] %s16_s19 }
   0x3   :  { %s29_s16 = sshll.u32 %s332_s15, 4  ;;  %s333_s20 = smov [#allocation2]   ;;  %s30_s16 = int_to_ptr.vmem [resolvable:$true] %s29_s16 }
   0x4   :  { %32 = dma.hbm_to_vmem [thread:$0]  %s28_s14, 32, %s30_s16, [#allocation6]  }
   0x5   :  { %s18_s21 = sshll.u32 %s333_s20, 4  ;;  %s37_s24 = sshll.u32 %s388_s2, 4  ;;  %s19_s21 = int_to_ptr.vmem [resolvable:$true] %s18_s21  ;;  %s38_s24 = int_to_ptr.hbm [resolvable:$true] %s37_s24 }
   0x6   :  { %21 = dma.hbm_to_vmem [thread:$0]  %s17_s19, 64, %s19_s21, [#allocation3]  }
   0x7   :  { %s334_s1 = smov [#allocation7]   ;;  %s335_s26 = smov 128  }
   0x8   :  { %s39_s25 = sshll.u32 %s334_s1, 4  ;;  %s336_s27 = smov 8   ;;  %s40_s25 = int_to_ptr.vmem [resolvable:$true] %s39_s25 }
   0x9   :  { %45 = dma.hbm_to_vmem [thread:$0]  %s38_s24, 256, %s40_s25, [#allocation6], %s335_s26, %s335_s26, %s336_s27  }
   0xa   :  { %326 = dma.done.wait [#allocation3], 64  }
   0xb   :  { %327 = vsyncadd [#allocation3], 4294967232 }
   0xc   :  { %328 = dma.done.wait [#allocation6], 288  }
   0xd   :  { %329 = vsyncadd [#allocation6], 4294967008  ;;  %v68_v0 = vld [vmem:[#allocation7] sm:$0xff]  ;;  %v59_v1 = vld [vmem:[#allocation5] sm:$0x3]  ;;  %vm83_vm0 = vcmask 1043456  }
   0xe   :  { %71 = vst [vmem:[#allocation1] ss:$2 sm:$0xff] %v68_v0  ;;  %v62_v2 = vperm.slane %v59_v1, 0  ;;  %v58_v3 = vld [vmem:[#allocation2] sm:$0xf]  ;;  %vm79_vm1 = vcmask 31744  }
   0xf   :  { %v69_v7 = vld [vmem:[#allocation7 + $0x8] sm:$0xff]  ;;  %v61_v8 = vrot.slane %v59_v1, 1  ;;  %s337_s0 = smov [#allocation8]   ;;  %s202_s30 = sshll.u32 %s389_s3, 4  ;;  %s203_s30 = int_to_ptr.hbm [resolvable:$true] %s202_s30 }
  0x10   :  { %v66_v4 = vmul.f32 %v62_v2, %v58_v3  ;;  %s200_s2 = sshll.u32 %s337_s0, 4  ;;  %s201_s2 = int_to_ptr.vmem [resolvable:$true] %s200_s2 }
  0x11   :  { %v63_v11 = vperm.slane %v61_v8, 0 }
  0x13   :  { %v67_v12 = vmul.f32 %v63_v11, %v58_v3 }
  0x15   :  { %v72_v5 = vld.sshfl [vmem:[#allocation1] sm:$0xff pattern:$0x75316420]  ;;  %v73_v6 = vld.sshfl [vmem:[#allocation1 + $0x8] sm:$0xff pattern:$0x75316420] }
  0x16   :  { %74 = vst [vmem:[#allocation1] ss:$2 sm:$0xff] %v68_v0  ;;  %218 = vmatpush.msk.msra.mxu1 %vm83_vm0, %v73_v6  ;;  %216 = vmatpush.msk.msra.mxu0 %vm83_vm0, %v72_v5 }
  0x17   :  { %219 = vmatmul.msk.f32.vlgmr.msra.gmra.mxu1 %vm79_vm1, %v66_v4  ;;  %217 = vmatmul.msk.f32.vlgmr.msra.gmra.mxu0 %vm79_vm1, %v66_v4 }
  0x1d   :  { %v75_v9 = vld.sshfl [vmem:[#allocation1] sm:$0xff pattern:$0x75316420]  ;;  %v76_v10 = vld.sshfl [vmem:[#allocation1 + $0x8] sm:$0xff pattern:$0x75316420] }
  0x1e   :  { %129 = vst [vmem:[#allocation1] ss:$2 sm:$0xff] %v69_v7 }
  0x25   :  { %v131_v13 = vld.sshfl [vmem:[#allocation1 + $0x8] sm:$0xff pattern:$0x75316420]  ;;  %v130_v14 = vld.sshfl [vmem:[#allocation1] sm:$0xff pattern:$0x75316420] }
  0x26   :  { %222 = vmatpush.msk.msra.mxu3 %vm83_vm0, %v131_v13  ;;  %132 = vst [vmem:[#allocation1] ss:$2 sm:$0xff] %v69_v7  ;;  %220 = vmatpush.msk.msra.mxu2 %vm83_vm0, %v130_v14 }
  0x27   :  { %223 = vmatmul.msk.f32.vlgmr.msra.gmra.mxu3 %vm79_vm1, %v67_v12  ;;  %221 = vmatmul.msk.f32.vlgmr.msra.gmra.mxu2 %vm79_vm1, %v67_v12 }
  0x2d   :  { %v134_v21 = vld.sshfl [vmem:[#allocation1 + $0x8] sm:$0xff pattern:$0x75316420]  ;;  %v133_v22 = vld.sshfl [vmem:[#allocation1] sm:$0xff pattern:$0x75316420] }
  0x94   :  { %v125_v15 = vpop.f32.mrf.mxu1  ;;  %v105_v16 = vpop.f32.mrf.mxu0 }
  0x95   :  { %v126_v17 = vadd.f32 %v125_v15, %v76_v10  ;;  %v106_v18 = vadd.f32 %v105_v16, %v75_v9 }
  0x97   :  { %v188_v19 = vrot.slane %v126_v17, 4 }
  0x99   :  { %v190_v20 = vsel %vm83_vm0, %v106_v18, %v188_v19 }
  0x9a   :  { %194 = vst [vmem:[#allocation8] sm:$0xff] %v190_v20 }
  0xaa   :  { %v181_v23 = vpop.f32.mrf.mxu3  ;;  %v161_v24 = vpop.f32.mrf.mxu2 }
  0xab   :  { %v182_v25 = vadd.f32 %v181_v23, %v134_v21  ;;  %v162_v26 = vadd.f32 %v161_v24, %v133_v22 }
  0xad   :  { %v189_v27 = vrot.slane %v182_v25, 4 }
  0xaf   :  { %v191_v28 = vsel %vm83_vm0, %v162_v26, %v189_v27 }
  0xb0   :  { %195 = vst [vmem:[#allocation8 + $0x8] sm:$0xff] %v191_v28 }
  0xb1   :  { %208 = dma.vmem_to_hbm [thread:$0]  %s201_s2, 256, %s203_s30, [#allocation4], %s335_s26, %s335_s26, %s336_s27  }
  0xb2   :  { %330 = dma.done.wait [#allocation4], 256  }
  0xb3   :  { %331 = vsyncadd [#allocation4], 4294967040 }
  0xb4   :  { %213 = vsyncpa [#allocation3], 1 }
  0xb5   :  { %214 = vsyncpa [#allocation6], 1 }
  0xb6   :  { %215 = vsyncpa [#allocation4], 1 }

</bundles_post_ra>
